<compile_context>
chip_gen: v5e
topology: v5e:2x2
jax: 0.10.0
libtpu: 0.0.40
codegen_flags: <defaults>
</compile_context>

<pallas_src>
import jax
import jax.numpy as jnp
from jax.experimental import pallas as pl
from jax.experimental.pallas import tpu as pltpu


def mlp_kernel(x_ref, w1_ref, b1_ref, w2_ref, b2_ref, w3_ref, b3_ref, o_ref):
    # x_ref: (f_in, T) VMEM tile, batch on lanes.
    # w*/b* refs: flat f32 arrays in SMEM, PyTorch row-major (out, in) order.
    f_in = x_ref.shape[0]
    d1 = b1_ref.shape[0]
    d2 = b2_ref.shape[0]
    d3 = b3_ref.shape[0]

    xs = [x_ref[k:k + 1, :] for k in range(f_in)]            # each (1, T)

    # fc1 + ReLU: fully unrolled scalar*vector FMAs on the VPU.
    h1 = []
    for f in range(d1):
        acc = w1_ref[f * f_in + 0] * xs[0]
        for k in range(1, f_in):
            acc = acc + w1_ref[f * f_in + k] * xs[k]
        h1.append(jnp.maximum(acc + b1_ref[f], 0.0))

    # fc2 + ReLU.
    h2 = []
    for g in range(d2):
        acc = w2_ref[g * d1 + 0] * h1[0]
        for f in range(1, d1):
            acc = acc + w2_ref[g * d1 + f] * h1[f]
        h2.append(jnp.maximum(acc + b2_ref[g], 0.0))

    # fc3 (no activation); d3 == 1 for Net but kept general.
    for j in range(d3):
        acc = w3_ref[j * d2 + 0] * h2[0]
        for g in range(1, d2):
            acc = acc + w3_ref[j * d2 + g] * h2[g]
        o_ref[j:j + 1, :] = (acc + b3_ref[j]).astype(o_ref.dtype)


def net_forward(x, params, *, batch_tile=2048):
    """Pallas Net.forward: fc1 -> relu -> fc2 -> relu -> fc3.

    `params` use PyTorch nn.Linear layout: weight (out, in), bias (out,).
    `x` is (batch, 2) float32; returns (batch, 1) float32.
    """
    w1, b1, w2, b2, w3, b3 = params
    B, f_in = x.shape
    d1 = w1.shape[0]
    d2 = w2.shape[0]
    d3 = w3.shape[0]
    assert batch_tile % 128 == 0, "batch_tile must be a multiple of 128 lanes"

    # Lane-dense layout: batch on the last (lane) axis, zero-pad ragged batch.
    n_tiles = pl.cdiv(B, batch_tile)
    b_pad = n_tiles * batch_tile
    x_t = jnp.transpose(x)                                    # (f_in, B)
    if b_pad != B:
        x_t = jnp.pad(x_t, ((0, 0), (0, b_pad - B)))

    smem = pl.BlockSpec(memory_space=pltpu.MemorySpace.SMEM)

    y_t = pl.pallas_call(
        mlp_kernel,
        out_shape=jax.ShapeDtypeStruct((d3, b_pad), jnp.float32),
        grid_spec=pltpu.PrefetchScalarGridSpec(
            num_scalar_prefetch=0,
            grid=(n_tiles,),
            in_specs=[
                pl.BlockSpec((f_in, batch_tile), lambda i: (0, i)),  # x tile
                smem, smem, smem, smem, smem, smem,  # w1,b1,w2,b2,w3,b3 flat
            ],
            out_specs=pl.BlockSpec((d3, batch_tile), lambda i: (0, i)),
        ),
        compiler_params=pltpu.CompilerParams(
            dimension_semantics=("parallel",)),
    )(x_t, w1.reshape(-1), b1, w2.reshape(-1), b2, w3.reshape(-1), b3)

    return y_t[:, :B].T                                       # (B, d3)


def init_params(key):
    """Deterministic params mirroring nn.Linear: weight (out, in), bias (out,)."""
    k1, k2, k3, k4, k5, k6 = jax.random.split(key, 6)
    w1 = jax.random.normal(k1, (4, 2), jnp.float32) * 0.5
    b1 = jax.random.normal(k2, (4,), jnp.float32) * 0.1
    w2 = jax.random.normal(k3, (8, 4), jnp.float32) * 0.5
    b2 = jax.random.normal(k4, (8,), jnp.float32) * 0.1
    w3 = jax.random.normal(k5, (1, 8), jnp.float32) * 0.5
    b3 = jax.random.normal(k6, (1,), jnp.float32) * 0.1
    return (w1, b1, w2, b2, w3, b3)


def reference_forward(x, params):
    w1, b1, w2, b2, w3, b3 = params
    h1 = jnp.maximum(x @ w1.T + b1, 0.0)
    h2 = jnp.maximum(h1 @ w2.T + b2, 0.0)
    return h2 @ w3.T + b3


if __name__ == "__main__":
    key = jax.random.PRNGKey(0)
    key_x, key_p = jax.random.split(key)

    # Ragged batch: exercises zero-padding (300 -> 512) and a 2-step grid.
    B = 300
    x = jax.random.normal(key_x, (B, 2), jnp.float32)
    params = init_params(key_p)

    y = net_forward(x, params, batch_tile=256)
    y = jax.block_until_ready(y)

    y_ref = reference_forward(x, params)
    assert y.shape == (B, 1), y.shape
    assert jnp.allclose(y, y_ref, atol=1e-5, rtol=1e-5), "mismatch vs reference"

    print("KERNEL_OK")
</pallas_src>

<mosaic_0001>
module attributes {stable_mosaic.version = 11 : i64} {
  func.func @mlp_kernel(%arg0: i32, %arg1: memref<2x256xf32, #tpu.memory_space<vmem>>, %arg2: memref<8xf32, #tpu.memory_space<smem>>, %arg3: memref<4xf32, #tpu.memory_space<smem>>, %arg4: memref<32xf32, #tpu.memory_space<smem>>, %arg5: memref<8xf32, #tpu.memory_space<smem>>, %arg6: memref<8xf32, #tpu.memory_space<smem>>, %arg7: memref<1xf32, #tpu.memory_space<smem>>, %arg8: memref<1x256xf32, #tpu.memory_space<vmem>>) attributes {dimension_semantics = [#tpu.dimension_semantics<parallel>], iteration_bounds = array<i64: 2>, scalar_prefetch = 0 : i64, scratch_operands = 0 : i64, tpu.core_type = #tpu.core_type<tc>, window_params = [{transform_indices = @transform_0, window_bounds = array<i64: 2, 256>}, {transform_indices = @transform_1, window_bounds = array<i64: 8>}, {transform_indices = @transform_2, window_bounds = array<i64: 4>}, {transform_indices = @transform_3, window_bounds = array<i64: 32>}, {transform_indices = @transform_4, window_bounds = array<i64: 8>}, {transform_indices = @transform_5, window_bounds = array<i64: 8>}, {transform_indices = @transform_6, window_bounds = array<i64: 1>}, {transform_indices = @transform_7, window_bounds = array<i64: 1, 256>}]} {
    %c0 = arith.constant 0 : index
    %c0_0 = arith.constant 0 : index
    %0 = vector.load %arg1[%c0, %c0_0] : memref<2x256xf32, #tpu.memory_space<vmem>>, vector<1x256xf32>
    %c1 = arith.constant 1 : index
    %c0_1 = arith.constant 0 : index
    %1 = vector.load %arg1[%c1, %c0_1] : memref<2x256xf32, #tpu.memory_space<vmem>>, vector<1x256xf32>
    %c0_2 = arith.constant 0 : index
    %2 = memref.load %arg2[%c0_2] : memref<8xf32, #tpu.memory_space<smem>>
    %3 = vector.broadcast %2 : f32 to vector<1x256xf32>
    %4 = arith.mulf %3, %0 : vector<1x256xf32>
    %c1_3 = arith.constant 1 : index
    %5 = memref.load %arg2[%c1_3] : memref<8xf32, #tpu.memory_space<smem>>
    %6 = vector.broadcast %5 : f32 to vector<1x256xf32>
    %7 = arith.mulf %6, %1 : vector<1x256xf32>
    %8 = arith.addf %4, %7 : vector<1x256xf32>
    %c0_4 = arith.constant 0 : index
    %9 = memref.load %arg3[%c0_4] : memref<4xf32, #tpu.memory_space<smem>>
    %10 = vector.broadcast %9 : f32 to vector<1x256xf32>
    %11 = arith.addf %8, %10 : vector<1x256xf32>
    %cst = arith.constant 0.000000e+00 : f32
    %12 = vector.broadcast %cst : f32 to vector<1x256xf32>
    %13 = arith.maximumf %11, %12 : vector<1x256xf32>
    %c2 = arith.constant 2 : index
    %14 = memref.load %arg2[%c2] : memref<8xf32, #tpu.memory_space<smem>>
    %15 = vector.broadcast %14 : f32 to vector<1x256xf32>
    %16 = arith.mulf %15, %0 : vector<1x256xf32>
    %c3 = arith.constant 3 : index
    %17 = memref.load %arg2[%c3] : memref<8xf32, #tpu.memory_space<smem>>
    %18 = vector.broadcast %17 : f32 to vector<1x256xf32>
    %19 = arith.mulf %18, %1 : vector<1x256xf32>
    %20 = arith.addf %16, %19 : vector<1x256xf32>
    %c1_5 = arith.constant 1 : index
    %21 = memref.load %arg3[%c1_5] : memref<4xf32, #tpu.memory_space<smem>>
    %22 = vector.broadcast %21 : f32 to vector<1x256xf32>
    %23 = arith.addf %20, %22 : vector<1x256xf32>
    %cst_6 = arith.constant 0.000000e+00 : f32
    %24 = vector.broadcast %cst_6 : f32 to vector<1x256xf32>
    %25 = arith.maximumf %23, %24 : vector<1x256xf32>
    %c4 = arith.constant 4 : index
    %26 = memref.load %arg2[%c4] : memref<8xf32, #tpu.memory_space<smem>>
    %27 = vector.broadcast %26 : f32 to vector<1x256xf32>
    %28 = arith.mulf %27, %0 : vector<1x256xf32>
    %c5 = arith.constant 5 : index
    %29 = memref.load %arg2[%c5] : memref<8xf32, #tpu.memory_space<smem>>
    %30 = vector.broadcast %29 : f32 to vector<1x256xf32>
    %31 = arith.mulf %30, %1 : vector<1x256xf32>
    %32 = arith.addf %28, %31 : vector<1x256xf32>
    %c2_7 = arith.constant 2 : index
    %33 = memref.load %arg3[%c2_7] : memref<4xf32, #tpu.memory_space<smem>>
    %34 = vector.broadcast %33 : f32 to vector<1x256xf32>
    %35 = arith.addf %32, %34 : vector<1x256xf32>
    %cst_8 = arith.constant 0.000000e+00 : f32
    %36 = vector.broadcast %cst_8 : f32 to vector<1x256xf32>
    %37 = arith.maximumf %35, %36 : vector<1x256xf32>
    %c6 = arith.constant 6 : index
    %38 = memref.load %arg2[%c6] : memref<8xf32, #tpu.memory_space<smem>>
    %39 = vector.broadcast %38 : f32 to vector<1x256xf32>
    %40 = arith.mulf %39, %0 : vector<1x256xf32>
    %c7 = arith.constant 7 : index
    %41 = memref.load %arg2[%c7] : memref<8xf32, #tpu.memory_space<smem>>
    %42 = vector.broadcast %41 : f32 to vector<1x256xf32>
    %43 = arith.mulf %42, %1 : vector<1x256xf32>
    %44 = arith.addf %40, %43 : vector<1x256xf32>
    %c3_9 = arith.constant 3 : index
    %45 = memref.load %arg3[%c3_9] : memref<4xf32, #tpu.memory_space<smem>>
    %46 = vector.broadcast %45 : f32 to vector<1x256xf32>
    %47 = arith.addf %44, %46 : vector<1x256xf32>
    %cst_10 = arith.constant 0.000000e+00 : f32
    %48 = vector.broadcast %cst_10 : f32 to vector<1x256xf32>
    %49 = arith.maximumf %47, %48 : vector<1x256xf32>
    %c0_11 = arith.constant 0 : index
    %50 = memref.load %arg4[%c0_11] : memref<32xf32, #tpu.memory_space<smem>>
    %51 = vector.broadcast %50 : f32 to vector<1x256xf32>
    %52 = arith.mulf %51, %13 : vector<1x256xf32>
    %c1_12 = arith.constant 1 : index
    %53 = memref.load %arg4[%c1_12] : memref<32xf32, #tpu.memory_space<smem>>
    %54 = vector.broadcast %53 : f32 to vector<1x256xf32>
    %55 = arith.mulf %54, %25 : vector<1x256xf32>
    %56 = arith.addf %52, %55 : vector<1x256xf32>
    %c2_13 = arith.constant 2 : index
    %57 = memref.load %arg4[%c2_13] : memref<32xf32, #tpu.memory_space<smem>>
    %58 = vector.broadcast %57 : f32 to vector<1x256xf32>
    %59 = arith.mulf %58, %37 : vector<1x256xf32>
    %60 = arith.addf %56, %59 : vector<1x256xf32>
    %c3_14 = arith.constant 3 : index
    %61 = memref.load %arg4[%c3_14] : memref<32xf32, #tpu.memory_space<smem>>
    %62 = vector.broadcast %61 : f32 to vector<1x256xf32>
    %63 = arith.mulf %62, %49 : vector<1x256xf32>
    %64 = arith.addf %60, %63 : vector<1x256xf32>
    %c0_15 = arith.constant 0 : index
    %65 = memref.load %arg5[%c0_15] : memref<8xf32, #tpu.memory_space<smem>>
    %66 = vector.broadcast %65 : f32 to vector<1x256xf32>
    %67 = arith.addf %64, %66 : vector<1x256xf32>
    %cst_16 = arith.constant 0.000000e+00 : f32
    %68 = vector.broadcast %cst_16 : f32 to vector<1x256xf32>
    %69 = arith.maximumf %67, %68 : vector<1x256xf32>
    %c4_17 = arith.constant 4 : index
    %70 = memref.load %arg4[%c4_17] : memref<32xf32, #tpu.memory_space<smem>>
    %71 = vector.broadcast %70 : f32 to vector<1x256xf32>
    %72 = arith.mulf %71, %13 : vector<1x256xf32>
    %c5_18 = arith.constant 5 : index
    %73 = memref.load %arg4[%c5_18] : memref<32xf32, #tpu.memory_space<smem>>
    %74 = vector.broadcast %73 : f32 to vector<1x256xf32>
    %75 = arith.mulf %74, %25 : vector<1x256xf32>
    %76 = arith.addf %72, %75 : vector<1x256xf32>
    %c6_19 = arith.constant 6 : index
    %77 = memref.load %arg4[%c6_19] : memref<32xf32, #tpu.memory_space<smem>>
    %78 = vector.broadcast %77 : f32 to vector<1x256xf32>
    %79 = arith.mulf %78, %37 : vector<1x256xf32>
    %80 = arith.addf %76, %79 : vector<1x256xf32>
    %c7_20 = arith.constant 7 : index
    %81 = memref.load %arg4[%c7_20] : memref<32xf32, #tpu.memory_space<smem>>
    %82 = vector.broadcast %81 : f32 to vector<1x256xf32>
    %83 = arith.mulf %82, %49 : vector<1x256xf32>
    %84 = arith.addf %80, %83 : vector<1x256xf32>
    %c1_21 = arith.constant 1 : index
    %85 = memref.load %arg5[%c1_21] : memref<8xf32, #tpu.memory_space<smem>>
    %86 = vector.broadcast %85 : f32 to vector<1x256xf32>
    %87 = arith.addf %84, %86 : vector<1x256xf32>
    %cst_22 = arith.constant 0.000000e+00 : f32
    %88 = vector.broadcast %cst_22 : f32 to vector<1x256xf32>
    %89 = arith.maximumf %87, %88 : vector<1x256xf32>
    %c8 = arith.constant 8 : index
    %90 = memref.load %arg4[%c8] : memref<32xf32, #tpu.memory_space<smem>>
    %91 = vector.broadcast %90 : f32 to vector<1x256xf32>
    %92 = arith.mulf %91, %13 : vector<1x256xf32>
    %c9 = arith.constant 9 : index
    %93 = memref.load %arg4[%c9] : memref<32xf32, #tpu.memory_space<smem>>
    %94 = vector.broadcast %93 : f32 to vector<1x256xf32>
    %95 = arith.mulf %94, %25 : vector<1x256xf32>
    %96 = arith.addf %92, %95 : vector<1x256xf32>
    %c10 = arith.constant 10 : index
    %97 = memref.load %arg4[%c10] : memref<32xf32, #tpu.memory_space<smem>>
    %98 = vector.broadcast %97 : f32 to vector<1x256xf32>
    %99 = arith.mulf %98, %37 : vector<1x256xf32>
    %100 = arith.addf %96, %99 : vector<1x256xf32>
    %c11 = arith.constant 11 : index
    %101 = memref.load %arg4[%c11] : memref<32xf32, #tpu.memory_space<smem>>
    %102 = vector.broadcast %101 : f32 to vector<1x256xf32>
    %103 = arith.mulf %102, %49 : vector<1x256xf32>
    %104 = arith.addf %100, %103 : vector<1x256xf32>
    %c2_23 = arith.constant 2 : index
    %105 = memref.load %arg5[%c2_23] : memref<8xf32, #tpu.memory_space<smem>>
    %106 = vector.broadcast %105 : f32 to vector<1x256xf32>
    %107 = arith.addf %104, %106 : vector<1x256xf32>
    %cst_24 = arith.constant 0.000000e+00 : f32
    %108 = vector.broadcast %cst_24 : f32 to vector<1x256xf32>
    %109 = arith.maximumf %107, %108 : vector<1x256xf32>
    %c12 = arith.constant 12 : index
    %110 = memref.load %arg4[%c12] : memref<32xf32, #tpu.memory_space<smem>>
    %111 = vector.broadcast %110 : f32 to vector<1x256xf32>
    %112 = arith.mulf %111, %13 : vector<1x256xf32>
    %c13 = arith.constant 13 : index
    %113 = memref.load %arg4[%c13] : memref<32xf32, #tpu.memory_space<smem>>
    %114 = vector.broadcast %113 : f32 to vector<1x256xf32>
    %115 = arith.mulf %114, %25 : vector<1x256xf32>
    %116 = arith.addf %112, %115 : vector<1x256xf32>
    %c14 = arith.constant 14 : index
    %117 = memref.load %arg4[%c14] : memref<32xf32, #tpu.memory_space<smem>>
    %118 = vector.broadcast %117 : f32 to vector<1x256xf32>
    %119 = arith.mulf %118, %37 : vector<1x256xf32>
    %120 = arith.addf %116, %119 : vector<1x256xf32>
    %c15 = arith.constant 15 : index
    %121 = memref.load %arg4[%c15] : memref<32xf32, #tpu.memory_space<smem>>
    %122 = vector.broadcast %121 : f32 to vector<1x256xf32>
    %123 = arith.mulf %122, %49 : vector<1x256xf32>
    %124 = arith.addf %120, %123 : vector<1x256xf32>
    %c3_25 = arith.constant 3 : index
    %125 = memref.load %arg5[%c3_25] : memref<8xf32, #tpu.memory_space<smem>>
    %126 = vector.broadcast %125 : f32 to vector<1x256xf32>
    %127 = arith.addf %124, %126 : vector<1x256xf32>
    %cst_26 = arith.constant 0.000000e+00 : f32
    %128 = vector.broadcast %cst_26 : f32 to vector<1x256xf32>
    %129 = arith.maximumf %127, %128 : vector<1x256xf32>
    %c16 = arith.constant 16 : index
    %130 = memref.load %arg4[%c16] : memref<32xf32, #tpu.memory_space<smem>>
    %131 = vector.broadcast %130 : f32 to vector<1x256xf32>
    %132 = arith.mulf %131, %13 : vector<1x256xf32>
    %c17 = arith.constant 17 : index
    %133 = memref.load %arg4[%c17] : memref<32xf32, #tpu.memory_space<smem>>
    %134 = vector.broadcast %133 : f32 to vector<1x256xf32>
    %135 = arith.mulf %134, %25 : vector<1x256xf32>
    %136 = arith.addf %132, %135 : vector<1x256xf32>
    %c18 = arith.constant 18 : index
    %137 = memref.load %arg4[%c18] : memref<32xf32, #tpu.memory_space<smem>>
    %138 = vector.broadcast %137 : f32 to vector<1x256xf32>
    %139 = arith.mulf %138, %37 : vector<1x256xf32>
    %140 = arith.addf %136, %139 : vector<1x256xf32>
    %c19 = arith.constant 19 : index
    %141 = memref.load %arg4[%c19] : memref<32xf32, #tpu.memory_space<smem>>
    %142 = vector.broadcast %141 : f32 to vector<1x256xf32>
    %143 = arith.mulf %142, %49 : vector<1x256xf32>
    %144 = arith.addf %140, %143 : vector<1x256xf32>
    %c4_27 = arith.constant 4 : index
    %145 = memref.load %arg5[%c4_27] : memref<8xf32, #tpu.memory_space<smem>>
    %146 = vector.broadcast %145 : f32 to vector<1x256xf32>
    %147 = arith.addf %144, %146 : vector<1x256xf32>
    %cst_28 = arith.constant 0.000000e+00 : f32
    %148 = vector.broadcast %cst_28 : f32 to vector<1x256xf32>
    %149 = arith.maximumf %147, %148 : vector<1x256xf32>
    %c20 = arith.constant 20 : index
    %150 = memref.load %arg4[%c20] : memref<32xf32, #tpu.memory_space<smem>>
    %151 = vector.broadcast %150 : f32 to vector<1x256xf32>
    %152 = arith.mulf %151, %13 : vector<1x256xf32>
    %c21 = arith.constant 21 : index
    %153 = memref.load %arg4[%c21] : memref<32xf32, #tpu.memory_space<smem>>
    %154 = vector.broadcast %153 : f32 to vector<1x256xf32>
    %155 = arith.mulf %154, %25 : vector<1x256xf32>
    %156 = arith.addf %152, %155 : vector<1x256xf32>
    %c22 = arith.constant 22 : index
    %157 = memref.load %arg4[%c22] : memref<32xf32, #tpu.memory_space<smem>>
    %158 = vector.broadcast %157 : f32 to vector<1x256xf32>
    %159 = arith.mulf %158, %37 : vector<1x256xf32>
    %160 = arith.addf %156, %159 : vector<1x256xf32>
    %c23 = arith.constant 23 : index
    %161 = memref.load %arg4[%c23] : memref<32xf32, #tpu.memory_space<smem>>
    %162 = vector.broadcast %161 : f32 to vector<1x256xf32>
    %163 = arith.mulf %162, %49 : vector<1x256xf32>
    %164 = arith.addf %160, %163 : vector<1x256xf32>
    %c5_29 = arith.constant 5 : index
    %165 = memref.load %arg5[%c5_29] : memref<8xf32, #tpu.memory_space<smem>>
    %166 = vector.broadcast %165 : f32 to vector<1x256xf32>
    %167 = arith.addf %164, %166 : vector<1x256xf32>
    %cst_30 = arith.constant 0.000000e+00 : f32
    %168 = vector.broadcast %cst_30 : f32 to vector<1x256xf32>
    %169 = arith.maximumf %167, %168 : vector<1x256xf32>
    %c24 = arith.constant 24 : index
    %170 = memref.load %arg4[%c24] : memref<32xf32, #tpu.memory_space<smem>>
    %171 = vector.broadcast %170 : f32 to vector<1x256xf32>
    %172 = arith.mulf %171, %13 : vector<1x256xf32>
    %c25 = arith.constant 25 : index
    %173 = memref.load %arg4[%c25] : memref<32xf32, #tpu.memory_space<smem>>
    %174 = vector.broadcast %173 : f32 to vector<1x256xf32>
    %175 = arith.mulf %174, %25 : vector<1x256xf32>
    %176 = arith.addf %172, %175 : vector<1x256xf32>
    %c26 = arith.constant 26 : index
    %177 = memref.load %arg4[%c26] : memref<32xf32, #tpu.memory_space<smem>>
    %178 = vector.broadcast %177 : f32 to vector<1x256xf32>
    %179 = arith.mulf %178, %37 : vector<1x256xf32>
    %180 = arith.addf %176, %179 : vector<1x256xf32>
    %c27 = arith.constant 27 : index
    %181 = memref.load %arg4[%c27] : memref<32xf32, #tpu.memory_space<smem>>
    %182 = vector.broadcast %181 : f32 to vector<1x256xf32>
    %183 = arith.mulf %182, %49 : vector<1x256xf32>
    %184 = arith.addf %180, %183 : vector<1x256xf32>
    %c6_31 = arith.constant 6 : index
    %185 = memref.load %arg5[%c6_31] : memref<8xf32, #tpu.memory_space<smem>>
    %186 = vector.broadcast %185 : f32 to vector<1x256xf32>
    %187 = arith.addf %184, %186 : vector<1x256xf32>
    %cst_32 = arith.constant 0.000000e+00 : f32
    %188 = vector.broadcast %cst_32 : f32 to vector<1x256xf32>
    %189 = arith.maximumf %187, %188 : vector<1x256xf32>
    %c28 = arith.constant 28 : index
    %190 = memref.load %arg4[%c28] : memref<32xf32, #tpu.memory_space<smem>>
    %191 = vector.broadcast %190 : f32 to vector<1x256xf32>
    %192 = arith.mulf %191, %13 : vector<1x256xf32>
    %c29 = arith.constant 29 : index
    %193 = memref.load %arg4[%c29] : memref<32xf32, #tpu.memory_space<smem>>
    %194 = vector.broadcast %193 : f32 to vector<1x256xf32>
    %195 = arith.mulf %194, %25 : vector<1x256xf32>
    %196 = arith.addf %192, %195 : vector<1x256xf32>
    %c30 = arith.constant 30 : index
    %197 = memref.load %arg4[%c30] : memref<32xf32, #tpu.memory_space<smem>>
    %198 = vector.broadcast %197 : f32 to vector<1x256xf32>
    %199 = arith.mulf %198, %37 : vector<1x256xf32>
    %200 = arith.addf %196, %199 : vector<1x256xf32>
    %c31 = arith.constant 31 : index
    %201 = memref.load %arg4[%c31] : memref<32xf32, #tpu.memory_space<smem>>
    %202 = vector.broadcast %201 : f32 to vector<1x256xf32>
    %203 = arith.mulf %202, %49 : vector<1x256xf32>
    %204 = arith.addf %200, %203 : vector<1x256xf32>
    %c7_33 = arith.constant 7 : index
    %205 = memref.load %arg5[%c7_33] : memref<8xf32, #tpu.memory_space<smem>>
    %206 = vector.broadcast %205 : f32 to vector<1x256xf32>
    %207 = arith.addf %204, %206 : vector<1x256xf32>
    %cst_34 = arith.constant 0.000000e+00 : f32
    %208 = vector.broadcast %cst_34 : f32 to vector<1x256xf32>
    %209 = arith.maximumf %207, %208 : vector<1x256xf32>
    %c0_35 = arith.constant 0 : index
    %210 = memref.load %arg6[%c0_35] : memref<8xf32, #tpu.memory_space<smem>>
    %211 = vector.broadcast %210 : f32 to vector<1x256xf32>
    %212 = arith.mulf %211, %69 : vector<1x256xf32>
    %c1_36 = arith.constant 1 : index
    %213 = memref.load %arg6[%c1_36] : memref<8xf32, #tpu.memory_space<smem>>
    %214 = vector.broadcast %213 : f32 to vector<1x256xf32>
    %215 = arith.mulf %214, %89 : vector<1x256xf32>
    %216 = arith.addf %212, %215 : vector<1x256xf32>
    %c2_37 = arith.constant 2 : index
    %217 = memref.load %arg6[%c2_37] : memref<8xf32, #tpu.memory_space<smem>>
    %218 = vector.broadcast %217 : f32 to vector<1x256xf32>
    %219 = arith.mulf %218, %109 : vector<1x256xf32>
    %220 = arith.addf %216, %219 : vector<1x256xf32>
    %c3_38 = arith.constant 3 : index
    %221 = memref.load %arg6[%c3_38] : memref<8xf32, #tpu.memory_space<smem>>
    %222 = vector.broadcast %221 : f32 to vector<1x256xf32>
    %223 = arith.mulf %222, %129 : vector<1x256xf32>
    %224 = arith.addf %220, %223 : vector<1x256xf32>
    %c4_39 = arith.constant 4 : index
    %225 = memref.load %arg6[%c4_39] : memref<8xf32, #tpu.memory_space<smem>>
    %226 = vector.broadcast %225 : f32 to vector<1x256xf32>
    %227 = arith.mulf %226, %149 : vector<1x256xf32>
    %228 = arith.addf %224, %227 : vector<1x256xf32>
    %c5_40 = arith.constant 5 : index
    %229 = memref.load %arg6[%c5_40] : memref<8xf32, #tpu.memory_space<smem>>
    %230 = vector.broadcast %229 : f32 to vector<1x256xf32>
    %231 = arith.mulf %230, %169 : vector<1x256xf32>
    %232 = arith.addf %228, %231 : vector<1x256xf32>
    %c6_41 = arith.constant 6 : index
    %233 = memref.load %arg6[%c6_41] : memref<8xf32, #tpu.memory_space<smem>>
    %234 = vector.broadcast %233 : f32 to vector<1x256xf32>
    %235 = arith.mulf %234, %189 : vector<1x256xf32>
    %236 = arith.addf %232, %235 : vector<1x256xf32>
    %c7_42 = arith.constant 7 : index
    %237 = memref.load %arg6[%c7_42] : memref<8xf32, #tpu.memory_space<smem>>
    %238 = vector.broadcast %237 : f32 to vector<1x256xf32>
    %239 = arith.mulf %238, %209 : vector<1x256xf32>
    %240 = arith.addf %236, %239 : vector<1x256xf32>
    %c0_43 = arith.constant 0 : index
    %241 = memref.load %arg7[%c0_43] : memref<1xf32, #tpu.memory_space<smem>>
    %242 = vector.broadcast %241 : f32 to vector<1x256xf32>
    %243 = arith.addf %240, %242 : vector<1x256xf32>
    %c0_44 = arith.constant 0 : index
    %c0_45 = arith.constant 0 : index
    %244 = vector.load %arg8[%c0_44, %c0_45] : memref<1x256xf32, #tpu.memory_space<vmem>>, vector<1x256xf32>
    tpu.vector_store %arg8[%c0_44, %c0_45], %243 {strides = array<i32>} : memref<1x256xf32, #tpu.memory_space<vmem>>, vector<1x256xf32>,
    return
  }
  func.func @transform_0(%arg0: i32) -> (i32, i32) {
    %c0_i32 = arith.constant 0 : i32
    %c0_i32_0 = arith.constant 0 : i32
    return %c0_i32, %arg0 : i32, i32
  }
  func.func @transform_1(%arg0: i32) -> i32 {
    %c0_i32 = arith.constant 0 : i32
    %c0_i32_0 = arith.constant 0 : i32
    return %c0_i32 : i32
  }
  func.func @transform_2(%arg0: i32) -> i32 {
    %c0_i32 = arith.constant 0 : i32
    %c0_i32_0 = arith.constant 0 : i32
    return %c0_i32 : i32
  }
  func.func @transform_3(%arg0: i32) -> i32 {
    %c0_i32 = arith.constant 0 : i32
    %c0_i32_0 = arith.constant 0 : i32
    return %c0_i32 : i32
  }
  func.func @transform_4(%arg0: i32) -> i32 {
    %c0_i32 = arith.constant 0 : i32
    %c0_i32_0 = arith.constant 0 : i32
    return %c0_i32 : i32
  }
  func.func @transform_5(%arg0: i32) -> i32 {
    %c0_i32 = arith.constant 0 : i32
    %c0_i32_0 = arith.constant 0 : i32
    return %c0_i32 : i32
  }
  func.func @transform_6(%arg0: i32) -> i32 {
    %c0_i32 = arith.constant 0 : i32
    %c0_i32_0 = arith.constant 0 : i32
    return %c0_i32 : i32
  }
  func.func @transform_7(%arg0: i32) -> (i32, i32) {
    %c0_i32 = arith.constant 0 : i32
    %c0_i32_0 = arith.constant 0 : i32
    return %c0_i32, %arg0 : i32, i32
  }
}

</mosaic_0001>

<bundles_post_ra>
// kernel: tpu_custom_call.1
= control target key start
LH: loop header
LB: loop body
LE: loop exit
PB: predicated region body
PF: predicated region fallthrough
CT: control target
= control target key end

     0   :  { %s1497_s0 = inlined_call_operand.hbm [shape: f32[2,512], index: 0, kind: input, shape index: {}]   ;;  %s1498_s1 = inlined_call_operand.vmem [shape: f32[8], index: 1, kind: input, shape index: {}]   ;;  %s1499_s2 = inlined_call_operand.vmem [shape: f32[4], index: 2, kind: input, shape index: {}]   ;;  %s1500_s3 = inlined_call_operand.vmem [shape: f32[32], index: 3, kind: input, shape index: {}]   ;;  %s1501_s4 = inlined_call_operand.vmem [shape: f32[8], index: 4, kind: input, shape index: {}]   ;;  %s1502_s5 = inlined_call_operand.vmem [shape: f32[8], index: 5, kind: input, shape index: {}]   ;;  %s1503_s6 = inlined_call_operand.<no memory space> [shape: f32[1], index: 6, kind: input, shape index: {}]   ;;  %s1504_s7 = inlined_call_operand.hbm [shape: f32[1,512], index: 7, kind: output, shape index: {}]  }
   0x1   :  { %1505 = sst [smem:[#allocation20_spill]] %s1497_s0 }
   0x2   :  { %1506 = sst [smem:[#allocation21_spill]] %s1498_s1 }
   0x3   :  { %1507 = sst [smem:[#allocation22_spill]] %s1499_s2 }
   0x4   :  { %1508 = sst [smem:[#allocation23_spill]] %s1500_s3 }
   0x5   :  { %1509 = sst [smem:[#allocation24_spill]] %s1501_s4 }
   0x6   :  { %1510 = sst [smem:[#allocation25_spill]] %s1502_s5 }
   0x7   :  { %12 = sst [smem:[#allocation2]] %s1503_s6 }
   0x8   :  { %13 = vsyncpa [#allocation4], 0 }
   0x9   :  { %15 = vsyncpa [#allocation4 + $0x1], 0 }
   0xa   :  { %16 = vsyncpa [#allocation6], 0 }
   0xb   :  { %17 = vsyncpa [#allocation9], 0 }
   0xc   :  { %18 = vsyncpa [#allocation12], 0 }
   0xd   :  { %19 = vsyncpa [#allocation5], 0 }
   0xe   :  { %21 = vsyncpa [#allocation5 + $0x1], 0  ;;  %s1148_s26 = smov 0   ;;  %s1150_s27 = smov 0  }
   0xf   :  { %s1152_s28 = smov 0   ;;  %s1154_s29 = smov 0  }
  0x10 LB: > { %s1511_s2 = sld [smem:[#allocation22_spill]]  ;;  %s1172_s9 = sadd.s32 4294967295, %s1098_s29   ;;  %s1098_s29 = sphi %s1154_s29, %s1527_s29   ;;  %s1094_s28 = sphi %s1152_s28, %s1526_s28   ;;  %s1090_s27 = sphi %s1150_s27, %s1525_s27   ;;  %s1086_s26 = sphi %s1148_s26, %s1524_s26  }
  0x11   : > { %p739_p0 = scmp.ge.s32.totalorder %s1098_s29, 1  ;;  %p48_p1 = scmp.eq.s32.totalorder %s1172_s9, 0 }
  0x12   : > { %p210_p2 = scmp.lt.s32.totalorder %s1098_s29, 3  ;;  %s1513_s4 = sld [smem:[#allocation24_spill]] }
  0x13   : > { %s1514_s1 = sld [smem:[#allocation21_spill]]  ;;  %s1100_s21 = smov [#allocation8]  }
  0x14   : > { %p1177_p3 = pnand %p739_p0, %p210_p2  ;;  %s1516_s3 = sld [smem:[#allocation23_spill]] }
  0x15   : > { %s1101_s22 = smov [#allocation11]   ;;  %s1102_s23 = smov [#allocation7]  }
  0x16   : > { %s232_s8 = sshll.u32 %s1511_s2, 4  ;;  %p842_p5 = pneg %p1177_p3  ;;  %s233_s8 = int_to_ptr.vmem [resolvable:$true] %s232_s8 }
  0x17   : > { %s1103_s24 = smov [#allocation10]   ;;  %s1517_s5 = sld [smem:[#allocation25_spill]] }
  0x18   : > { %s252_s13 = sshll.u32 %s1513_s4, 4  ;;  %p1192_p6 = pnand %p842_p5, %p48_p1  ;;  %s253_s13 = int_to_ptr.vmem [resolvable:$true] %s252_s13 }
  0x19   : > { %s222_s16 = sshll.u32 %s1514_s1, 4  ;;  %s738_s11 = sadd.s32 4294967294, %s1098_s29   ;;  %s223_s16 = int_to_ptr.vmem [resolvable:$true] %s222_s16 }
  0x1a   : > { %s242_s20 = sshll.u32 %s1516_s3, 4  ;;  %s1214_s12 = sadd.s32 1, %s1098_s29   ;;  %s243_s20 = int_to_ptr.vmem [resolvable:$true] %s242_s20 }
  0x1b   : > { %848 = dma.vmem_to_smem (!%p1192_p6), %s233_s8, 16, %s1100_s21, [#allocation9]  }
  0x1c   : > { %854 = dma.vmem_to_smem (!%p1192_p6), %s253_s13, 16, %s1101_s22, [#allocation12]  }
  0x1d   : > { %845 = dma.vmem_to_smem (!%p1192_p6), %s223_s16, 16, %s1102_s23, [#allocation6]  }
  0x1e   : > { %851 = dma.vmem_to_smem (!%p1192_p6), %s243_s20, 16, %s1103_s24, [#allocation9]  }
  0x1f   : > { %s262_s30 = sshll.u32 %s1517_s5, 4  ;;  %s1104_s8 = smov [#allocation13]   ;;  %s263_s30 = int_to_ptr.vmem [resolvable:$true] %s262_s30 }
  0x20   : > { %857 = dma.vmem_to_smem (!%p1192_p6), %s263_s30, 16, %s1104_s8, [#allocation12]  }
  0x21   : > { %s34_s13 = sadd.s32 1, %s1094_s28  ;;  %s31_s14 = ssub.s32 %s1098_s29, %s1214_s12 }
  0x22   : > { %p41_p7 = scmp.ne.s32.totalorder %s1094_s28, %s1090_s27  ;;  %p32_p8 = scmp.eq.s32.totalorder %s31_s14, 0 }
  0x23   : > { %p42_p9 = scmp.eq.s32.totalorder %s1098_s29, 0  ;;  %p47_p10 = scmp.ne.s32.totalorder %s1090_s27, %s1086_s26 }
  0x24   : > { %p197_p11 = scmp.eq.s32.totalorder %s1172_s9, 1  ;;  %p203_p0 = scmp.eq.s32.totalorder %s738_s11, 1 }
  0x25   : > { %s1226_s15 = scalar_select %p32_p8, %s1094_s28, %s34_s13  }
  0x26   : > { %p1230_p12 = por %p48_p1, %p47_p10  ;;  %p1234_p13 = por %p197_p11, %p41_p7 }
  0x27   : > { %p43_p2 = por %p42_p9, %p41_p7  ;;  %s276_s18 = sand.u32 1, %s1094_s28  }
  0x28   : > { %p1239_p5 = por %p203_p0, %p47_p10  ;;  %p871_p6 = scmp.lt.s32.totalorder %s1098_s29, 2 }
  0x29   : > { %s746_s20 = sshll.u32 %s276_s18, 2  ;;  %s817_s21 = sshll.u32 %s1098_s29, 2 }
  0x2a   : > { %s1521_s0 = sld [smem:[#allocation20_spill]]  ;;  %s280_s6 = scalar_lea.vmem [#allocation3], %s746_s20 }
  0x2b   : > { %s289_s30 = sshll.u32 %s280_s6, 4  ;;  %p1248_p8 = pnand %p871_p6, %p43_p2  ;;  %s290_s30 = int_to_ptr.vmem [resolvable:$true] %s289_s30 }
  0x2c   : > { %s277_s11 = scalar_lea.sflag [#allocation4], %s276_s18 }
  0x2d   : > { %p994_p9 = pneg %p1248_p8 }
  0x30   : > { %s285_s24 = scalar_lea.hbm %s1521_s0, %s817_s21  ;;  %s997_s20 = scalar_lea.hbm %s1521_s0, 8 }
  0x31   : > { %s287_s25 = sshll.u32 %s285_s24, 4  ;;  %s288_s25 = int_to_ptr.hbm [resolvable:$true] %s287_s25 }
  0x32   : > { %s990_s13 = sshra.s32 %s288_s25, 4  ;;  %s991_s13 = int_to_ptr.hbm [resolvable:$true] %s990_s13 }
  0x33   : > { %s992_s14 = scalar_lea.hbm %s991_s13, 4  ;;  %p998_p0 = scmp.lt.s32.totalorder %s991_s13, %s1521_s0 }
  0x34   : > { %p993_p7 = scmp.ne.s32.totalorder %s991_s13, %s992_s14  ;;  %p999_p2 = scmp.lt.s32.totalorder %s997_s20, %s992_s14 }
  0x36   : > { %p995_p10 = pnand %p994_p9, %p993_p7  ;;  %p1000_p6 = por %p999_p2, %p998_p0 }
  0x38   : > { %p996_p11 = pneg %p995_p10 }
  0x3a   : > { %p1001_p4 = pnand %p1000_p6, %p996_p11 }
  0x3c   : > { %1004 = shalt.err (!%p1001_p4)
}
  0x3d   : > { %861 = dma.hbm_to_vmem [thread:$0]  (!%p1248_p8), %s288_s25, 64, %s290_s30, %s277_s11  }
  0x3e   : > { %298 = sbr.rel (%p1177_p3) target bundleno = 157 (0x9d), region = 48  ;;  %s1265_s18 = sand.u32 (!%p1177_p3), 1, %s1090_s27  }
  0x3f   : > { %s750_s6 = sshll.u32 (!%p1177_p3), %s1265_s18, 2  ;;  %s301_s21 = scalar_lea.sflag (!%p1177_p3), [#allocation4], %s1265_s18 }
  0x40   : > { %s304_s22 = scalar_lea.vmem (!%p1177_p3), [#allocation3], %s750_s6 }
  0x43   : > { %1065 = dma.done.wait (%p1230_p12), %s301_s21, 64  }
  0x44   : > { %1067 = vsyncadd (%p1230_p12), %s301_s21, 4294967232 }
  0x45   : > { %1069 = dma.done.wait (%p48_p1), [#allocation6], 16  }
  0x46   : > { %1071 = vsyncadd (%p48_p1), [#allocation6], 4294967280 }
  0x47   : > { %1073 = dma.done.wait (%p48_p1), [#allocation9], 32  }
  0x48   : > { %1075 = vsyncadd (%p48_p1), [#allocation9], 4294967264 }
  0x49   : > { %1077 = dma.done.wait (%p48_p1), [#allocation12], 32  }
  0x4a   : > { %1079 = vsyncadd (%p48_p1), [#allocation12], 4294967264 }
  0x4b   : > { %335 = sfence }
  0x4c   : > { %s367_s10 = sld [smem:[#allocation7]]  ;;  %v364_v0 = vld [vmem:[%s304_s22] ss:$2 sm:$0x3] }
  0x4d   : > { %s758_s16 = sld [smem:[#allocation7 + $0x1]]  ;;  %v757_v1 = vld [vmem:[%s304_s22 + $0x1] ss:$2 sm:$0x3] }
  0x4e   : > { %s1285_s25 = sld [smem:[#allocation8]] }
  0x4f   : > { %s759_s30 = sld [smem:[#allocation7 + $0x2]] }
  0x50   : > { %s760_s8 = sld [smem:[#allocation7 + $0x3]] }
  0x51   : > { %s1287_s11 = sld [smem:[#allocation8 + $0x1]] }
  0x52   : > { %s762_s13 = sld [smem:[#allocation7 + $0x4]]  ;;  %v368_v2 = vstv %s367_s10 }
  0x53   : > { %s763_s14 = sld [smem:[#allocation7 + $0x5]]  ;;  %v371_v3 = vstv %s758_s16  ;;  %v369_v6 = vmul.f32 %v368_v2, %v364_v0 }
  0x54   : > { %s1289_s20 = sld [smem:[#allocation8 + $0x2]]  ;;  %v372_v7 = vmul.f32 %v757_v1, %v371_v3  ;;  %v375_v14 = vstv %s1285_s25 }
  0x55   : > { %v379_v4 = vstv %s759_s30  ;;  %s765_s23 = sld [smem:[#allocation7 + $0x6]] }
  0x56   : > { %v382_v5 = vstv %s760_s8  ;;  %s766_s24 = sld [smem:[#allocation7 + $0x7]]  ;;  %v380_v8 = vmul.f32 %v379_v4, %v364_v0  ;;  %v373_v12 = vadd.f32 %v372_v7, %v369_v6 }
  0x57   : > { %s1291_s6 = sld [smem:[#allocation8 + $0x3]]  ;;  %v383_v9 = vmul.f32 %v757_v1, %v382_v5  ;;  %v386_v15 = vstv %s1287_s11 }
  0x58   : > { %s1293_s21 = sld [smem:[#allocation10]]  ;;  %v390_v10 = vstv %s762_s13  ;;  %v376_v20 = vadd.f32 %v375_v14, %v373_v12 }
  0x59   : > { %s1295_s0 = sld [smem:[#allocation10 + $0x1]]  ;;  %v393_v11 = vstv %s763_s14  ;;  %v384_v13 = vadd.f32 %v383_v9, %v380_v8  ;;  %v391_v16 = vmul.f32 %v390_v10, %v364_v0 }
  0x5a   : > { %s1297_s22 = sld [smem:[#allocation10 + $0x2]]  ;;  %v394_v17 = vmul.f32 %v757_v1, %v393_v11  ;;  %v397_v25 = vstv %s1289_s20  ;;  %v1320_v26 = vmax.f32 %v376_v20, 0.0 }
  0x5b   : > { %s1299_s10 = sld [smem:[#allocation10 + $0x3]]  ;;  %v401_v18 = vstv %s765_s23  ;;  %v387_v21 = vadd.f32 %v386_v15, %v384_v13 }
  0x5c   : > { %s1301_s16 = sld [smem:[#allocation11]]  ;;  %v404_v19 = vstv %s766_s24  ;;  %v395_v22 = vadd.f32 %v394_v17, %v391_v16  ;;  %v402_v23 = vmul.f32 %v401_v18, %v364_v0 }
  0x5d   : > { %s1305_s30 = sld [smem:[#allocation10 + $0x4]]  ;;  %v405_v24 = vmul.f32 %v757_v1, %v404_v19  ;;  %v1322_v27 = vmax.f32 %v387_v21, 0.0  ;;  %v408_v32 = vstv %s1291_s6 }
  0x5e   : > { %s1307_s8 = sld [smem:[#allocation10 + $0x5]]  ;;  %v398_v28 = vadd.f32 %v397_v25, %v395_v22  ;;  %v412_v30 = vstv %s1293_s21 }
  0x5f   : > { %s1309_s13 = sld [smem:[#allocation10 + $0x6]]  ;;  %v406_v29 = vadd.f32 %v405_v24, %v402_v23  ;;  %v415_v31 = vstv %s1295_s0  ;;  %v413_v33 = vmul.f32 %v412_v30, %v1320_v26 }
  0x60   : > { %s1311_s14 = sld [smem:[#allocation10 + $0x7]]  ;;  %v416_v34 = vmul.f32 %v415_v31, %v1322_v27  ;;  %v1339_v35 = vmax.f32 %v398_v28, 0.0  ;;  %v419_v37 = vstv %s1297_s22 }
  0x61   : > { %s1313_s25 = sld [smem:[#allocation11 + $0x1]]  ;;  %v409_v36 = vadd.f32 %v408_v32, %v406_v29  ;;  %v423_v41 = vstv %s1299_s10 }
  0x62   : > { %s1316_s11 = sld [smem:[#allocation10 + $0x8]]  ;;  %v417_v40 = vadd.f32 %v416_v34, %v413_v33  ;;  %v420_v43 = vmul.f32 %v419_v37, %v1339_v35  ;;  %v427_v6 = vstv %s1301_s16 }
  0x63   : > { %s1318_s23 = sld [smem:[#allocation10 + $0x9]]  ;;  %v431_v38 = vstv %s1305_s30  ;;  %v1351_v42 = vmax.f32 %v409_v36, 0.0 }
  0x64   : > { %s1324_s24 = sld [smem:[#allocation10 + $0xa]]  ;;  %v434_v39 = vstv %s1307_s8  ;;  %v432_v46 = vmul.f32 %v431_v38, %v1320_v26  ;;  %v421_v54 = vadd.f32 %v420_v43, %v417_v40 }
  0x65   : > { %s1328_s1 = sld [smem:[#allocation10 + $0xb]]  ;;  %v435_v47 = vmul.f32 %v434_v39, %v1322_v27  ;;  %v438_v50 = vstv %s1309_s13  ;;  %v424_v55 = vmul.f32 %v423_v41, %v1351_v42 }
  0x66   : > { %s1331_s20 = sld [smem:[#allocation11 + $0x2]]  ;;  %v439_v59 = vmul.f32 %v438_v50, %v1339_v35  ;;  %v442_v62 = vstv %s1311_s14 }
  0x67   : > { %s1333_s2 = sld [smem:[#allocation10 + $0xc]]  ;;  %v436_v58 = vadd.f32 %v435_v47, %v432_v46  ;;  %v425_v9 = vadd.f32 %v424_v55, %v421_v54  ;;  %v443_v11 = vmul.f32 %v442_v62, %v1351_v42  ;;  %v446_v28 = vstv %s1313_s25 }
  0x68   : > { %s1337_s3 = sld [smem:[#allocation10 + $0xd]]  ;;  %v450_v44 = vstv %s1316_s11 }
  0x69   : > { %s1341_s0 = sld [smem:[#allocation10 + $0xe]]  ;;  %v453_v45 = vstv %s1318_s23  ;;  %v451_v51 = vmul.f32 %v450_v44, %v1320_v26  ;;  %v440_v10 = vadd.f32 %v439_v59, %v436_v58  ;;  %v1412_v25 = vadd.f32 %v427_v6, %v425_v9 }
  0x6a   : > { %s1344_s6 = sld [smem:[#allocation10 + $0xf]]  ;;  %v454_v52 = vmul.f32 %v453_v45, %v1322_v27  ;;  %v457_v53 = vstv %s1324_s24 }
  0x6b   : > { %s1348_s21 = sld [smem:[#allocation11 + $0x3]]  ;;  %v458_v63 = vmul.f32 %v457_v53, %v1339_v35  ;;  %v461_v3 = vstv %s1328_s1  ;;  %v444_v34 = vadd.f32 %v443_v11, %v440_v10  ;;  %v429_v55 = vmax.f32 %v1412_v25, 0.0 }
  0x6c   : > { %s786_s4 = sld [smem:[#allocation10 + $0x10]]  ;;  %v455_v2 = vadd.f32 %v454_v52, %v451_v51  ;;  %v462_v13 = vmul.f32 %v461_v3, %v1351_v42  ;;  %v465_v37 = vstv %s1331_s20 }
  0x6d   : > { %s787_s5 = sld [smem:[#allocation10 + $0x11]]  ;;  %v469_v48 = vstv %s1333_s2  ;;  %v447_v51 = vadd.f32 %v446_v28, %v444_v34 }
  0x6e   : > { %v472_v49 = vstv %s1337_s3  ;;  %s1360_s22 = sld [smem:[#allocation10 + $0x12]]  ;;  %v470_v56 = vmul.f32 %v469_v48, %v1320_v26  ;;  %v459_v17 = vadd.f32 %v458_v63, %v455_v2 }
  0x6f   : > { %s1363_s10 = sld [smem:[#allocation10 + $0x13]]  ;;  %v473_v57 = vmul.f32 %v472_v49, %v1322_v27  ;;  %v476_v60 = vstv %s1341_s0  ;;  %v448_v3 = vmax.f32 %v447_v51, 0.0 }
  0x70   : > { %s1368_s30 = sld [smem:[#allocation11 + $0x4]]  ;;  %v477_v8 = vmul.f32 %v476_v60, %v1339_v35  ;;  %v480_v12 = vstv %s1344_s6  ;;  %v463_v36 = vadd.f32 %v462_v13, %v459_v17 }
  0x71   : > { %s1373_s2 = sld [smem:[#allocation10 + $0x14]]  ;;  %v474_v7 = vadd.f32 %v473_v57, %v470_v56  ;;  %v481_v22 = vmul.f32 %v480_v12, %v1351_v42  ;;  %v484_v40 = vstv %s1348_s21 }
  0x72   : > { %v488_v61 = vstv %s786_s4  ;;  %s1377_s3 = sld [smem:[#allocation10 + $0x15]]  ;;  %v466_v56 = vadd.f32 %v465_v37, %v463_v36 }
  0x73   : > { %v489_v0 = vmul.f32 %v488_v61, %v1320_v26  ;;  %v491_v1 = vstv %s787_s5  ;;  %s1382_s8 = sld [smem:[#allocation10 + $0x16]]  ;;  %v478_v21 = vadd.f32 %v477_v8, %v474_v7 }
  0x74   : > { %v492_v4 = vmul.f32 %v491_v1, %v1322_v27  ;;  %v495_v5 = vstv %s1360_s22  ;;  %s1387_s13 = sld [smem:[#allocation10 + $0x17]]  ;;  %v467_v7 = vmax.f32 %v466_v56, 0.0 }
  0x75   : > { %s1391_s4 = sld [smem:[#allocation11 + $0x5]]  ;;  %v496_v15 = vmul.f32 %v495_v5, %v1339_v35  ;;  %v499_v18 = vstv %s1363_s10  ;;  %v482_v39 = vadd.f32 %v481_v22, %v478_v21 }
  0x76   : > { %s1395_s1 = sld [smem:[#allocation10 + $0x18]]  ;;  %v493_v14 = vadd.f32 %v492_v4, %v489_v0  ;;  %v500_v31 = vmul.f32 %v499_v18, %v1351_v42  ;;  %v503_v52 = vstv %s1368_s30 }
  0x77   : > { %v507_v16 = vstv %s1373_s2  ;;  %s1400_s5 = sld [smem:[#allocation10 + $0x19]]  ;;  %v485_v57 = vadd.f32 %v484_v40, %v482_v39 }
  0x78   : > { %v508_v19 = vmul.f32 %v507_v16, %v1320_v26  ;;  %v510_v20 = vstv %s1377_s3  ;;  %s1405_s16 = sld [smem:[#allocation10 + $0x1a]]  ;;  %v497_v30 = vadd.f32 %v496_v15, %v493_v14 }
  0x79   : > { %v511_v23 = vmul.f32 %v510_v20, %v1322_v27  ;;  %v514_v24 = vstv %s1382_s8  ;;  %s1410_s14 = sld [smem:[#allocation10 + $0x1b]]  ;;  %v486_v10 = vmax.f32 %v485_v57, 0.0 }
  0x7a   : > { %v515_v29 = vmul.f32 %v514_v24, %v1339_v35  ;;  %s1416_s11 = sld [smem:[#allocation11 + $0x6]]  ;;  %v518_v33 = vstv %s1387_s13  ;;  %v501_v48 = vadd.f32 %v500_v31, %v497_v30 }
  0x7b   : > { %v512_v32 = vadd.f32 %v511_v23, %v508_v19  ;;  %s1420_s23 = sld [smem:[#allocation10 + $0x1c]]  ;;  %v519_v45 = vmul.f32 %v518_v33, %v1351_v42  ;;  %v522_v0 = vstv %s1391_s4  ;;  %s756_s4 = sshll.u32 %s1265_s18, 1 }
  0x7c   : > { %v526_v38 = vstv %s1395_s1  ;;  %s1424_s24 = sld [smem:[#allocation10 + $0x1d]]  ;;  %v504_v63 = vadd.f32 %v503_v52, %v501_v48  ;;  %s814_s1 = sshll.u32 %s1172_s9, 1 }
  0x7d   : > { %v527_v41 = vmul.f32 %v526_v38, %v1320_v26  ;;  %v529_v43 = vstv %s1400_s5  ;;  %s1429_s25 = sld [smem:[#allocation10 + $0x1e]]  ;;  %v516_v44 = vadd.f32 %v515_v29, %v512_v32  ;;  %s603_s9 = scalar_lea.sflag [#allocation5], %s1265_s18 }
  0x7e   : > { %v530_v46 = vmul.f32 %v529_v43, %v1322_v27  ;;  %v533_v47 = vstv %s1405_s16  ;;  %s1434_s0 = sld [smem:[#allocation10 + $0x1f]]  ;;  %v597_v43 = vlaneseq }
  0x7f   : > { %v534_v49 = vmul.f32 %v533_v47, %v1339_v35  ;;  %v537_v50 = vstv %s1410_s14  ;;  %s1438_s20 = sld [smem:[#allocation11 + $0x7]]  ;;  %v520_v59 = vadd.f32 %v519_v45, %v516_v44  ;;  %s613_s14 = scalar_lea.hbm %s1504_s7, %s814_s1 }
  0x80   : > { %v531_v53 = vadd.f32 %v530_v46, %v527_v41  ;;  %v538_v54 = vmul.f32 %v537_v50, %v1351_v42  ;;  %s1442_s6 = sld [smem:[#allocation13]]  ;;  %v541_v8 = vstv %s1416_s11  ;;  %s361_s11 = scalar_lea.vmem [#allocation14], %s756_s4  ;;  %vm599_vm0 = vcmp.lt.s32.totalorder %v597_v43, 256 }
  0x81   : > { %v545_v58 = vstv %s1420_s23  ;;  %s1446_s21 = sld [smem:[#allocation13 + $0x1]]  ;;  %v523_v11 = vadd.f32 %v522_v0, %v520_v59  ;;  %s615_s23 = sshll.u32 %s361_s11, 4  ;;  %s616_s23 = int_to_ptr.vmem [resolvable:$true] %s615_s23 }
  0x82   : > { %v535_v60 = vadd.f32 %v534_v49, %v531_v53  ;;  %v546_v61 = vmul.f32 %v545_v58, %v1320_v26  ;;  %v548_v62 = vstv %s1424_s24  ;;  %s807_s22 = sld [smem:[#allocation13 + $0x2]]  ;;  %s617_s24 = sshll.u32 %s613_s14, 4  ;;  %s618_s24 = int_to_ptr.hbm [resolvable:$true] %s617_s24 }
  0x83   : > { %v549_v1 = vmul.f32 %v548_v62, %v1322_v27  ;;  %v552_v2 = vstv %s1429_s25  ;;  %s808_s10 = sld [smem:[#allocation13 + $0x3]]  ;;  %v505_v27 = vmax.f32 %v504_v63, 0.0  ;;  %v524_v21 = vmax.f32 %v523_v11, 0.0  ;;  %s1034_s25 = sshra.s32 %s618_s24, 4  ;;  %s1035_s25 = int_to_ptr.hbm [resolvable:$true] %s1034_s25 }
  0x84   : > { %v539_v4 = vadd.f32 %v538_v54, %v535_v60  ;;  %v553_v5 = vmul.f32 %v552_v2, %v1339_v35  ;;  %v556_v6 = vstv %s1434_s0  ;;  %s809_s30 = sld [smem:[#allocation13 + $0x4]]  ;;  %s1036_s0 = scalar_lea.hbm %s1035_s25, 2 }
  0x85   : > { %v550_v26 = vadd.f32 %v549_v1, %v546_v61  ;;  %v557_v9 = vmul.f32 %v556_v6, %v1351_v42  ;;  %s810_s2 = sld [smem:[#allocation13 + $0x5]]  ;;  %v560_v16 = vstv %s1438_s20  ;;  %p1037_p1 = scmp.ne.s32.totalorder %s1035_s25, %s1036_s0 }
  0x86   : > { %v564_v12 = vstv %s1442_s6  ;;  %s1458_s3 = sld [smem:[#allocation13 + $0x6]]  ;;  %v542_v35 = vadd.f32 %v541_v8, %v539_v4  ;;  %p1041_p12 = scmp.lt.s32.totalorder %s1035_s25, %s1504_s7 }
  0x87   : > { %v554_v13 = vadd.f32 %v553_v5, %v550_v26  ;;  %v565_v14 = vmul.f32 %v564_v12, %v429_v55  ;;  %v567_v15 = vstv %s1446_s21  ;;  %s812_s8 = sld [smem:[#allocation13 + $0x7]]  ;;  %p1038_p3 = pnand %p1037_p1, %p1234_p13 }
  0x88   : > { %v568_v17 = vmul.f32 %v567_v15, %v448_v3  ;;  %v571_v18 = vstv %s807_s22  ;;  %v543_v29 = vmax.f32 %v542_v35, 0.0  ;;  %s594_s13 = sld [smem:[#allocation2]]  ;;  %s1040_s21 = scalar_lea.hbm %s1504_s7, 4 }
  0x89   : > { %v558_v19 = vadd.f32 %v557_v9, %v554_v13  ;;  %v572_v20 = vmul.f32 %v571_v18, %v467_v7  ;;  %v575_v42 = vstv %s808_s10  ;;  %p1039_p4 = pneg %p1038_p3  ;;  %p1042_p8 = scmp.lt.s32.totalorder %s1040_s21, %s1036_s0 }
  0x8a   : > { %v569_v22 = vadd.f32 %v568_v17, %v565_v14  ;;  %v576_v23 = vmul.f32 %v575_v42, %v486_v10  ;;  %v579_v24 = vstv %s809_s30 }
  0x8b   : > { %v561_v25 = vadd.f32 %v560_v16, %v558_v19  ;;  %v583_v28 = vstv %s810_s2  ;;  %v580_v31 = vmul.f32 %v579_v24, %v505_v27  ;;  %p1043_p7 = por %p1042_p8, %p1041_p12 }
  0x8c   : > { %v573_v30 = vadd.f32 %v572_v20, %v569_v22  ;;  %v587_v32 = vstv %s1458_s3  ;;  %v584_v36 = vmul.f32 %v583_v28, %v524_v21 }
  0x8d   : > { %v562_v33 = vmax.f32 %v561_v25, 0.0  ;;  %v591_v37 = vstv %s812_s8  ;;  %v588_v39 = vmul.f32 %v587_v32, %v543_v29  ;;  %p1044_p9 = pnand %p1043_p7, %p1039_p4 }
  0x8e   : > { %v577_v34 = vadd.f32 %v576_v23, %v573_v30  ;;  %v595_v45 = vstv %s594_s13 }
  0x8f   : > { %v592_v41 = vmul.f32 %v591_v37, %v562_v33 }
  0x90   : > { %v581_v38 = vadd.f32 %v580_v31, %v577_v34 }
  0x92   : > { %v585_v40 = vadd.f32 %v584_v36, %v581_v38 }
  0x94   : > { %v589_v44 = vadd.f32 %v588_v39, %v585_v40 }
  0x96   : > { %v593_v46 = vadd.f32 %v592_v41, %v589_v44 }
  0x98   : > { %v596_v47 = vadd.f32 %v595_v45, %v593_v46 }
  0x9a   : > { %601 = vst.msk [vmem:[%s361_s11] sm:$0x3] %vm599_vm0, %v596_v47 }
  0x9b   : > { %1047 = shalt.err (!%p1044_p9)
}
  0x9c   : > { %840 = dma.vmem_to_hbm [thread:$0]  (%p1234_p13), %s616_s23, 32, %s618_s24, %s603_s9  }
  0x9d PF: > { %s629_s18 = sand.u32 1, %s1086_s26   ;;  %p1523_p10 = scmp.ge.s32.totalorder %s1098_s29, 2 }
  0x9e   : > { %s630_s30 = scalar_lea.sflag [#allocation5], %s629_s18 }
  0x9f   : > { %p863_p11 = pnand %p1523_p10, %p1239_p5 }
  0xa1   : > { %p864_p0 = pneg %p863_p11 }
  0xa3   : > { %1081 = dma.done.wait (%p864_p0), %s630_s30, 32  }
  0xa4   : > { %1083 = vsyncadd (%p864_p0), %s630_s30, 4294967264  ;;  %p24_p2 = scmp.ge.s32.totalorder %s1214_s12, 4   ;;  %s1524_s26 = smov %s1090_s27 }
  0xa5   : > { %s1525_s27 = smov %s1094_s28  ;;  %s1526_s28 = smov %s1226_s15 }
  0xa6   : > { %s1527_s29 = smov %s1214_s12  ;;  %26 = sbr.rel (!%p24_p2) target bundleno = 16 (0x10), region = 115 }
  0xab   :  { %636 = vsyncpa [#allocation4], 1 }
  0xac   :  { %638 = vsyncpa [#allocation4 + $0x1], 1 }
  0xad   :  { %639 = vsyncpa [#allocation5], 1 }
  0xae   :  { %641 = vsyncpa [#allocation5 + $0x1], 1 }
  0xaf   :  { %642 = vsyncpa [#allocation6], 1 }
  0xb0   :  { %644 = vsyncpa [#allocation6 + $0x1], 1 }
  0xb1   :  { %645 = vsyncpa [#allocation9], 1 }
  0xb2   :  { %646 = vsyncpa [#allocation12], 1 }

</bundles_post_ra>
